<compile_context>
chip_gen: v5e
topology: v5e:2x2
jax: 0.10.0
libtpu: 0.0.40
codegen_flags: <defaults>
</compile_context>

<pallas_src>
import functools

import jax
import jax.numpy as jnp
from jax.experimental import pallas as pl
from jax.experimental.pallas import tpu as pltpu


# ----------------------------------------------------------------------------
# Kernel: one (batch, seq-block) grid step.
#   kl_part  = sum_rows [ sum_v t_p * (log t_p - log s_p) ]  (T-scaled; rows with
#              seq position < min_seq)
#   ce_part  = sum_rows [ -log_softmax(student_raw)[label] ] (real rows, label != -100)
#   cnt_part = number of CE-valid rows
# written lane-dense into this step's (8, 128) partial-output slot.
# ----------------------------------------------------------------------------
def _distill_kernel(*refs, inv_temp, int_temp, seq_len, min_seq, compute_ce):
    if compute_ce:
        s_ref, t_ref, lab_ref, out_ref = refs
    else:
        s_ref, t_ref, out_ref = refs
        lab_ref = None

    bs, v = s_ref.shape
    s_raw = s_ref[...].astype(jnp.float32)           # (bs, V)
    t_raw = t_ref[...].astype(jnp.float32)           # (bs, V)

    # Per-row sequence position, computed in-kernel (no mask array from HBM).
    pos = pl.program_id(1) * bs + jax.lax.broadcasted_iota(jnp.int32, (bs, 1), 0)
    kl_valid = pos < min_seq                          # (bs, 1)

    # ---- student: ONE shared max/shift/exp feeds both KL and CE -------------
    # max(s / T) = max(s) / T for T > 0, so shift once on the raw logits.
    d_s = s_raw - jnp.max(s_raw, axis=-1, keepdims=True)      # (bs, V)
    s_sh = d_s * inv_temp                                     # (bs, V)
    s_e = jnp.exp(s_sh)                                       # (bs, V)
    s_sum = jnp.sum(s_e, axis=-1, keepdims=True)              # (bs, 1)

    # ---- teacher (temperature-scaled) ----------------------------------------
    t_sh = (t_raw - jnp.max(t_raw, axis=-1, keepdims=True)) * inv_temp
    t_exp = jnp.exp(t_sh)
    t_sum = jnp.sum(t_exp, axis=-1, keepdims=True)            # (bs, 1)
    wsum = jnp.sum(t_exp * (t_sh - s_sh), axis=-1, keepdims=True)

    # per row: sum_v t_p*(log t_p - log s_p) = wsum/t_sum + log(s_sum) - log(t_sum)
    kl_rows = (wsum * pl.reciprocal(t_sum, approx=False)
               + jnp.log(s_sum) - jnp.log(t_sum))
    # OOB / masked rows may hold garbage, but every reduction above is per-row,
    # so the row-wise select below confines it — no full-width zeroing needed.
    kl_part = jnp.sum(jnp.where(kl_valid, kl_rows, 0.0))

    if compute_ce:
        lab = lab_ref[...]                                    # (bs, 1) int32
        ce_valid = (pos < seq_len) & (lab != -100)
        # CE is on the raw (unscaled) student logits.  For integer temperature
        # exp(d_s) = exp(d_s / T) ** T, so reuse the exp already computed for KL
        # instead of issuing a second full-width EUP exp pass.
        if int_temp is not None:
            ce_exp = s_e
            for _ in range(int_temp - 1):
                ce_exp = ce_exp * s_e
        else:
            ce_exp = jnp.exp(d_s)
        ce_lse = jnp.log(jnp.sum(ce_exp, axis=-1, keepdims=True))    # (bs, 1)
        col = jax.lax.broadcasted_iota(jnp.int32, (bs, v), 1)
        picked = jnp.sum(jnp.where(col == lab, d_s, 0.0),
                         axis=-1, keepdims=True)                     # (bs, 1)
        nll = ce_lse - picked
        ce_part = jnp.sum(jnp.where(ce_valid, nll, 0.0))
        cnt_part = jnp.sum(ce_valid.astype(jnp.float32))
    else:
        ce_part = jnp.float32(0.0)
        cnt_part = jnp.float32(0.0)

    # Lane-dense per-step partials: kl_sum, ce_sum, ce_cnt in lanes 0..2 of sublane 0.
    sub = jax.lax.broadcasted_iota(jnp.int32, (8, 128), 0)
    lane = jax.lax.broadcasted_iota(jnp.int32, (8, 128), 1)
    r0 = sub == 0
    out_ref[...] = jnp.where(r0 & (lane == 0), kl_part,
                   jnp.where(r0 & (lane == 1), ce_part,
                   jnp.where(r0 & (lane == 2), cnt_part, jnp.float32(0.0))))


def _vmem_capacity_bytes():
    try:
        return int(pltpu.get_tpu_info().vmem_capacity_bytes)
    except Exception:
        return 64 << 20            # conservative (v7x-sized) fallback


def _pick_block_seq(seq_len, vocab, in_bytes):
    """Seq rows per block, derived from the device's VMEM capacity."""
    vmem_cap = _vmem_capacity_bytes()
    if vmem_cap >= (96 << 20):     # v5e / v6e: 128 MiB VMEM — use it
        budget_bytes = 72 << 20
        vmem_limit = 100 << 20
    else:                          # v7x: 64 MiB VMEM (or unknown) — stay tight
        budget_bytes = 24 << 20
        vmem_limit = 48 << 20
    # 2 logits inputs x 2 pipeline buffers in the input dtype, plus ~7 full-width
    # f32/int32 in-kernel temporaries (KL chain + CE iota/one-hot select).
    per_row_bytes = vocab * (4 * in_bytes + 28)
    bs = (budget_bytes // per_row_bytes) // 8 * 8
    bs = int(max(8, min(2048, bs)))
    if seq_len >= 8:
        bs = min(bs, (seq_len // 8) * 8)   # multiple of 8; ragged tail masked in-kernel
    else:
        bs = seq_len                       # full-dim block (no (8,128) constraint issue)
    return bs, vmem_limit


def distillation_loss(student_logits, teacher_logits, labels=None,
                      temperature=2.0, alpha=0.7):
    """JAX/Pallas equivalent of DistillationLoss.forward."""
    b, s_s, v = student_logits.shape
    b_t, s_t, v_t = teacher_logits.shape
    min_seq = min(s_s, s_t)
    if (b, v) != (b_t, v_t):
        raise ValueError(
            f"Shape mismatch after truncation: student={(b, min_seq, v)}, "
            f"teacher={(b_t, min_seq, v_t)}")

    in_bytes = jnp.dtype(student_logits.dtype).itemsize
    bs, vmem_limit = _pick_block_seq(s_s, v, in_bytes)
    nsj = pl.cdiv(s_s, bs)

    # Teacher streams from its native [B, S_t, V] layout (no pre-kernel HBM copy)
    # whenever its seq length covers the student's; seq blocks past min_seq are
    # never fetched and the straddling block is KL-masked in-kernel.
    if s_t >= s_s and (s_s >= 8 or s_t == s_s):
        teacher_in = teacher_logits
    elif s_t >= s_s:                   # tiny-seq edge case: align full dims exactly
        teacher_in = teacher_logits[:, :s_s, :]
    else:                              # teacher shorter: pad; padded rows KL-masked
        teacher_in = jnp.pad(teacher_logits, ((0, 0), (0, s_s - s_t), (0, 0)))

    compute_ce = labels is not None
    operands = [student_logits, teacher_in]
    in_specs = [
        pl.BlockSpec((None, bs, v), lambda bi, ji: (bi, ji, 0)),
        pl.BlockSpec((None, bs, v), lambda bi, ji: (bi, ji, 0)),
    ]
    if compute_ce:
        operands.append(labels.reshape(b, s_s, 1).astype(jnp.int32))
        in_specs.append(pl.BlockSpec((None, bs, 1), lambda bi, ji: (bi, ji, 0)))

    temp = float(temperature)
    int_temp = (int(round(temp))
                if abs(temp - round(temp)) < 1e-12 and 1 <= round(temp) <= 8
                else None)

    kern = functools.partial(
        _distill_kernel,
        inv_temp=1.0 / temp,
        int_temp=int_temp,
        seq_len=s_s,
        min_seq=min_seq,
        compute_ce=compute_ce)

    partials = pl.pallas_call(
        kern,
        out_shape=jax.ShapeDtypeStruct((b, nsj, 8, 128), jnp.float32),
        grid=(b, nsj),
        in_specs=in_specs,
        out_specs=pl.BlockSpec((None, None, 8, 128),
                               lambda bi, ji: (bi, ji, 0, 0)),
        compiler_params=pltpu.CompilerParams(
            dimension_semantics=("parallel", "parallel"),
            vmem_limit_bytes=vmem_limit,
        ),
    )(*operands)

    totals = jnp.sum(partials, axis=(0, 1))     # (8, 128) tiny reduce in plain JAX
    kl_sum = totals[0, 0]

    # F.kl_div(reduction='batchmean') on a [B, min_seq, V] input divides by B
    # (matches torch semantics for 3-D inputs).
    distill = kl_sum / jnp.float32(b) * jnp.float32(temp) ** 2
    if not compute_ce:
        return distill

    ce = totals[0, 1] / totals[0, 2]   # mean over non-ignored tokens (NaN if all -100, like torch)
    return (1.0 - alpha) * ce + alpha * distill


# ----------------------------------------------------------------------------
# Pure JAX reference (mirrors the PyTorch semantics) for validation.
# ----------------------------------------------------------------------------
def _reference(student_logits, teacher_logits, labels, temperature=2.0, alpha=0.7):
    b = student_logits.shape[0]
    v = student_logits.shape[-1]
    m = min(student_logits.shape[1], teacher_logits.shape[1])
    s = student_logits[:, :m, :] / temperature
    t = teacher_logits[:, :m, :] / temperature
    s_logp = jax.nn.log_softmax(s, axis=-1)
    t_p = jax.nn.softmax(t, axis=-1)
    kl = jnp.sum(t_p * (jnp.log(t_p) - s_logp)) / b
    distill = kl * temperature ** 2
    if labels is None:
        return distill
    logits = student_logits.reshape(-1, v)
    lab = labels.reshape(-1)
    logp = jax.nn.log_softmax(logits, axis=-1)
    valid = lab != -100
    safe = jnp.where(valid, lab, 0)
    nll = -jnp.take_along_axis(logp, safe[:, None], axis=-1)[:, 0]
    ce = jnp.sum(jnp.where(valid, nll, 0.0)) / jnp.sum(valid)
    return (1.0 - alpha) * ce + alpha * distill


if __name__ == "__main__":
    key = jax.random.PRNGKey(0)
    k1, k2, k3, k4, k5, k6 = jax.random.split(key, 6)

    B, S_STUDENT, S_TEACHER, V = 2, 8, 12, 128  # teacher longer -> native streaming, no copy
    student = jax.random.normal(k1, (B, S_STUDENT, V), dtype=jnp.float32)
    teacher = jax.random.normal(k2, (B, S_TEACHER, V), dtype=jnp.float32)
    labels = jax.random.randint(k3, (B, S_STUDENT), 0, V).astype(jnp.int32)
    labels = labels.at[0, 0].set(-100).at[1, 3].set(-100)  # exercise ignore_index

    out = jax.block_until_ready(distillation_loss(student, teacher, labels))
    ref = _reference(student, teacher, labels)
    assert jnp.allclose(out, ref, rtol=1e-5, atol=1e-5), (out, ref)

    # KL-only path (labels=None).
    out_kl = jax.block_until_ready(distillation_loss(student, teacher, None))
    ref_kl = _reference(student, teacher, None)
    assert jnp.allclose(out_kl, ref_kl, rtol=1e-5, atol=1e-5), (out_kl, ref_kl)

    # Teacher shorter than student -> exercises per-row KL masking + teacher padding.
    teacher_short = jax.random.normal(k4, (B, 6, V), dtype=jnp.float32)
    out_s = jax.block_until_ready(distillation_loss(student, teacher_short, labels))
    ref_s = _reference(student, teacher_short, labels)
    assert jnp.allclose(out_s, ref_s, rtol=1e-5, atol=1e-5), (out_s, ref_s)

    # Student seq not a multiple of the tile -> ragged last block masked in-kernel,
    # teacher still streamed natively (no copy).
    S_ODD = 9
    student_odd = jax.random.normal(k5, (B, S_ODD, V), dtype=jnp.float32)
    labels_odd = jax.random.randint(k6, (B, S_ODD), 0, V).astype(jnp.int32)
    labels_odd = labels_odd.at[0, 2].set(-100)
    out_o = jax.block_until_ready(distillation_loss(student_odd, teacher, labels_odd))
    ref_o = _reference(student_odd, teacher, labels_odd)
    assert jnp.allclose(out_o, ref_o, rtol=1e-5, atol=1e-5), (out_o, ref_o)

    print("KERNEL_OK")
</pallas_src>

<mosaic_0001>
module attributes {stable_mosaic.version = 11 : i64} {
  func.func @_distill_kernel(%arg0: i32, %arg1: i32, %arg2: memref<1x8x128xf32, #tpu.memory_space<vmem>>, %arg3: memref<1x8x128xf32, #tpu.memory_space<vmem>>, %arg4: memref<1x8x1xi32, #tpu.memory_space<vmem>>, %arg5: memref<1x1x8x128xf32, #tpu.memory_space<vmem>>) attributes {dimension_semantics = [#tpu.dimension_semantics<parallel>, #tpu.dimension_semantics<parallel>], iteration_bounds = array<i64: 2, 1>, scalar_prefetch = 0 : i64, scratch_operands = 0 : i64, tpu.core_type = #tpu.core_type<tc>, window_params = [{transform_indices = @transform_0, window_bounds = array<i64: 1, 8, 128>}, {transform_indices = @transform_1, window_bounds = array<i64: 1, 8, 128>}, {transform_indices = @transform_2, window_bounds = array<i64: 1, 8, 1>}, {transform_indices = @transform_3, window_bounds = array<i64: 1, 1, 8, 128>}]} {
    %c0 = arith.constant 0 : index
    %c0_0 = arith.constant 0 : index
    %c0_1 = arith.constant 0 : index
    %0 = vector.load %arg2[%c0, %c0_0, %c0_1] : memref<1x8x128xf32, #tpu.memory_space<vmem>>, vector<1x8x128xf32>
    %1 = vector.shape_cast %0 : vector<1x8x128xf32> to vector<8x128xf32>
    %c0_2 = arith.constant 0 : index
    %c0_3 = arith.constant 0 : index
    %c0_4 = arith.constant 0 : index
    %2 = vector.load %arg3[%c0_2, %c0_3, %c0_4] : memref<1x8x128xf32, #tpu.memory_space<vmem>>, vector<1x8x128xf32>
    %3 = vector.shape_cast %2 : vector<1x8x128xf32> to vector<8x128xf32>
    %c8_i32 = arith.constant 8 : i32
    %4 = arith.muli %arg1, %c8_i32 : i32
    %5 = tpu.iota {dimensions = array<i32: 0>} : vector<8x1xi32>
    %6 = vector.broadcast %4 : i32 to vector<8x1xi32>
    %7 = arith.addi %6, %5 : vector<8x1xi32>
    %c8_i32_5 = arith.constant 8 : i32
    %8 = vector.broadcast %c8_i32_5 : i32 to vector<8x1xi32>
    %9 = arith.cmpi slt, %7, %8 : vector<8x1xi32>
    %cst = arith.constant dense<0xFF800000> : vector<8xf32>
    %10 = vector.multi_reduction <maximumf>, %1, %cst [1] : vector<8x128xf32> to vector<8xf32>
    %11 = vector.shape_cast %10 : vector<8xf32> to vector<8x1xf32>
    %12 = vector.broadcast %11 : vector<8x1xf32> to vector<8x128xf32>
    %13 = arith.subf %1, %12 : vector<8x128xf32>
    %cst_6 = arith.constant 5.000000e-01 : f32
    %14 = vector.broadcast %cst_6 : f32 to vector<8x128xf32>
    %15 = arith.mulf %13, %14 : vector<8x128xf32>
    %16 = math.exp %15 : vector<8x128xf32>
    %cst_7 = arith.constant dense<0.000000e+00> : vector<8xf32>
    %17 = vector.multi_reduction <add>, %16, %cst_7 [1] : vector<8x128xf32> to vector<8xf32>
    %18 = vector.shape_cast %17 : vector<8xf32> to vector<8x1xf32>
    %cst_8 = arith.constant dense<0xFF800000> : vector<8xf32>
    %19 = vector.multi_reduction <maximumf>, %3, %cst_8 [1] : vector<8x128xf32> to vector<8xf32>
    %20 = vector.shape_cast %19 : vector<8xf32> to vector<8x1xf32>
    %21 = vector.broadcast %20 : vector<8x1xf32> to vector<8x128xf32>
    %22 = arith.subf %3, %21 : vector<8x128xf32>
    %cst_9 = arith.constant 5.000000e-01 : f32
    %23 = vector.broadcast %cst_9 : f32 to vector<8x128xf32>
    %24 = arith.mulf %22, %23 : vector<8x128xf32>
    %25 = math.exp %24 : vector<8x128xf32>
    %cst_10 = arith.constant dense<0.000000e+00> : vector<8xf32>
    %26 = vector.multi_reduction <add>, %25, %cst_10 [1] : vector<8x128xf32> to vector<8xf32>
    %27 = vector.shape_cast %26 : vector<8xf32> to vector<8x1xf32>
    %28 = arith.subf %24, %15 : vector<8x128xf32>
    %29 = arith.mulf %25, %28 : vector<8x128xf32>
    %cst_11 = arith.constant dense<0.000000e+00> : vector<8xf32>
    %30 = vector.multi_reduction <add>, %29, %cst_11 [1] : vector<8x128xf32> to vector<8xf32>
    %31 = vector.shape_cast %30 : vector<8xf32> to vector<8x1xf32>
    %32 = tpu.reciprocal %27 : vector<8x1xf32> -> vector<8x1xf32>
    %33 = arith.mulf %31, %32 : vector<8x1xf32>
    %34 = math.log %18 : vector<8x1xf32>
    %35 = arith.addf %33, %34 : vector<8x1xf32>
    %36 = math.log %27 : vector<8x1xf32>
    %37 = arith.subf %35, %36 : vector<8x1xf32>
    %cst_12 = arith.constant 0.000000e+00 : f32
    %38 = vector.broadcast %cst_12 : f32 to vector<8x1xf32>
    %39 = arith.select %9, %37, %38 : vector<8x1xi1>, vector<8x1xf32>
    %40 = vector.shape_cast %39 : vector<8x1xf32> to vector<1x8x1xf32>
    %cst_13 = arith.constant dense<0.000000e+00> : vector<1xf32>
    %41 = vector.multi_reduction <add>, %40, %cst_13 [1, 2] : vector<1x8x1xf32> to vector<1xf32>
    %42 = vector.shape_cast %41 : vector<1xf32> to vector<1x1x1xf32>
    %43 = vector.extract %42[0, 0, 0] : f32 from vector<1x1x1xf32>
    %c0_14 = arith.constant 0 : index
    %c0_15 = arith.constant 0 : index
    %c0_16 = arith.constant 0 : index
    %44 = vector.load %arg4[%c0_14, %c0_15, %c0_16] : memref<1x8x1xi32, #tpu.memory_space<vmem>>, vector<1x8x1xi32>
    %45 = vector.shape_cast %44 : vector<1x8x1xi32> to vector<8x1xi32>
    %c8_i32_17 = arith.constant 8 : i32
    %46 = vector.broadcast %c8_i32_17 : i32 to vector<8x1xi32>
    %47 = arith.cmpi slt, %7, %46 : vector<8x1xi32>
    %c-100_i32 = arith.constant -100 : i32
    %48 = vector.broadcast %c-100_i32 : i32 to vector<8x1xi32>
    %49 = arith.cmpi ne, %45, %48 : vector<8x1xi32>
    %50 = arith.andi %47, %49 : vector<8x1xi1>
    %51 = arith.mulf %16, %16 : vector<8x128xf32>
    %cst_18 = arith.constant dense<0.000000e+00> : vector<8xf32>
    %52 = vector.multi_reduction <add>, %51, %cst_18 [1] : vector<8x128xf32> to vector<8xf32>
    %53 = vector.shape_cast %52 : vector<8xf32> to vector<8x1xf32>
    %54 = math.log %53 : vector<8x1xf32>
    %55 = tpu.iota {dimensions = array<i32: 1>} : vector<8x128xi32>
    %56 = vector.broadcast %45 : vector<8x1xi32> to vector<8x128xi32>
    %57 = arith.cmpi eq, %55, %56 : vector<8x128xi32>
    %cst_19 = arith.constant 0.000000e+00 : f32
    %58 = vector.broadcast %cst_19 : f32 to vector<8x128xf32>
    %59 = arith.select %57, %13, %58 : vector<8x128xi1>, vector<8x128xf32>
    %cst_20 = arith.constant dense<0.000000e+00> : vector<8xf32>
    %60 = vector.multi_reduction <add>, %59, %cst_20 [1] : vector<8x128xf32> to vector<8xf32>
    %61 = vector.shape_cast %60 : vector<8xf32> to vector<8x1xf32>
    %62 = arith.subf %54, %61 : vector<8x1xf32>
    %cst_21 = arith.constant 0.000000e+00 : f32
    %63 = vector.broadcast %cst_21 : f32 to vector<8x1xf32>
    %64 = arith.select %50, %62, %63 : vector<8x1xi1>, vector<8x1xf32>
    %65 = vector.shape_cast %64 : vector<8x1xf32> to vector<1x8x1xf32>
    %cst_22 = arith.constant dense<0.000000e+00> : vector<1xf32>
    %66 = vector.multi_reduction <add>, %65, %cst_22 [1, 2] : vector<1x8x1xf32> to vector<1xf32>
    %67 = vector.shape_cast %66 : vector<1xf32> to vector<1x1x1xf32>
    %68 = vector.extract %67[0, 0, 0] : f32 from vector<1x1x1xf32>
    %69 = arith.extui %50 : vector<8x1xi1> to vector<8x1xi32>
    %70 = arith.sitofp %69 : vector<8x1xi32> to vector<8x1xf32>
    %71 = vector.shape_cast %70 : vector<8x1xf32> to vector<1x8x1xf32>
    %cst_23 = arith.constant dense<0.000000e+00> : vector<1xf32>
    %72 = vector.multi_reduction <add>, %71, %cst_23 [1, 2] : vector<1x8x1xf32> to vector<1xf32>
    %73 = vector.shape_cast %72 : vector<1xf32> to vector<1x1x1xf32>
    %74 = vector.extract %73[0, 0, 0] : f32 from vector<1x1x1xf32>
    %75 = tpu.iota {dimensions = array<i32: 0>} : vector<8x128xi32>
    %76 = tpu.iota {dimensions = array<i32: 1>} : vector<8x128xi32>
    %c0_i32 = arith.constant 0 : i32
    %77 = vector.broadcast %c0_i32 : i32 to vector<8x128xi32>
    %78 = arith.cmpi eq, %75, %77 : vector<8x128xi32>
    %c0_i32_24 = arith.constant 0 : i32
    %79 = vector.broadcast %c0_i32_24 : i32 to vector<8x128xi32>
    %80 = arith.cmpi eq, %76, %79 : vector<8x128xi32>
    %81 = arith.andi %78, %80 : vector<8x128xi1>
    %c1_i32 = arith.constant 1 : i32
    %82 = vector.broadcast %c1_i32 : i32 to vector<8x128xi32>
    %83 = arith.cmpi eq, %76, %82 : vector<8x128xi32>
    %84 = arith.andi %78, %83 : vector<8x128xi1>
    %c2_i32 = arith.constant 2 : i32
    %85 = vector.broadcast %c2_i32 : i32 to vector<8x128xi32>
    %86 = arith.cmpi eq, %76, %85 : vector<8x128xi32>
    %87 = arith.andi %78, %86 : vector<8x128xi1>
    %cst_25 = arith.constant 0.000000e+00 : f32
    %88 = vector.broadcast %74 : f32 to vector<8x128xf32>
    %89 = vector.broadcast %cst_25 : f32 to vector<8x128xf32>
    %90 = arith.select %87, %88, %89 : vector<8x128xi1>, vector<8x128xf32>
    %91 = vector.broadcast %68 : f32 to vector<8x128xf32>
    %92 = arith.select %84, %91, %90 : vector<8x128xi1>, vector<8x128xf32>
    %93 = vector.broadcast %43 : f32 to vector<8x128xf32>
    %94 = arith.select %81, %93, %92 : vector<8x128xi1>, vector<8x128xf32>
    %c0_26 = arith.constant 0 : index
    %c0_27 = arith.constant 0 : index
    %c0_28 = arith.constant 0 : index
    %c0_29 = arith.constant 0 : index
    %95 = vector.load %arg5[%c0_26, %c0_27, %c0_28, %c0_29] : memref<1x1x8x128xf32, #tpu.memory_space<vmem>>, vector<1x1x8x128xf32>
    %96 = vector.shape_cast %95 : vector<1x1x8x128xf32> to vector<8x128xf32>
    %97 = vector.shape_cast %94 : vector<8x128xf32> to vector<1x1x8x128xf32>
    tpu.vector_store %arg5[%c0_26, %c0_27, %c0_28, %c0_29], %97 {strides = array<i32>} : memref<1x1x8x128xf32, #tpu.memory_space<vmem>>, vector<1x1x8x128xf32>,
    return
  }
  func.func @transform_0(%arg0: i32, %arg1: i32) -> (i32, i32, i32) {
    %c0_i32 = arith.constant 0 : i32
    %c0_i32_0 = arith.constant 0 : i32
    return %arg0, %arg1, %c0_i32 : i32, i32, i32
  }
  func.func @transform_1(%arg0: i32, %arg1: i32) -> (i32, i32, i32) {
    %c0_i32 = arith.constant 0 : i32
    %c0_i32_0 = arith.constant 0 : i32
    return %arg0, %arg1, %c0_i32 : i32, i32, i32
  }
  func.func @transform_2(%arg0: i32, %arg1: i32) -> (i32, i32, i32) {
    %c0_i32 = arith.constant 0 : i32
    %c0_i32_0 = arith.constant 0 : i32
    return %arg0, %arg1, %c0_i32 : i32, i32, i32
  }
  func.func @transform_3(%arg0: i32, %arg1: i32) -> (i32, i32, i32, i32) {
    %c0_i32 = arith.constant 0 : i32
    %c0_i32_0 = arith.constant 0 : i32
    %c0_i32_1 = arith.constant 0 : i32
    return %arg0, %arg1, %c0_i32, %c0_i32_0 : i32, i32, i32, i32
  }
}

</mosaic_0001>

<bundles_post_ra>
// kernel: tpu_custom_call.1
= control target key start
LH: loop header
LB: loop body
LE: loop exit
PB: predicated region body
PF: predicated region fallthrough
CT: control target
= control target key end

     0   :  { %8 = vsyncpa [#allocation3], 0  ;;  %s800_s0 = inlined_call_operand.vmem [shape: f32[2,8,128], index: 0, kind: input, shape index: {}]   ;;  %s801_s1 = inlined_call_operand.vmem [shape: f32[2,12,128], index: 1, kind: input, shape index: {}]   ;;  %s802_s2 = inlined_call_operand.vmem [shape: s32[2,8,1], index: 2, kind: input, shape index: {}]   ;;  %s803_s3 = inlined_call_operand.hbm [shape: f32[2,1,8,128], index: 3, kind: output, shape index: {}]  }
   0x1   :  { %10 = vsyncpa [#allocation3 + $0x1], 0  ;;  %s682_s12 = smov 0   ;;  %s684_s13 = smov 0  }
   0x2   :  { %s686_s14 = smov 0   ;;  %s688_s15 = smov 0  }
   0x3   :  { %s690_s16 = smov 0   ;;  %s692_s17 = smov 0  }
   0x4 LB: > { %s487_s18 = sadd.s32 4294967295, %s658_s17   ;;  %s488_s19 = sadd.s32 4294967294, %s658_s17   ;;  %s658_s17 = sphi %s692_s17, %s16_s17   ;;  %s654_s16 = sphi %s690_s16, %s810_s16   ;;  %s650_s15 = sphi %s688_s15, %s809_s15   ;;  %s646_s14 = sphi %s686_s14, %s808_s14   ;;  %s642_s13 = sphi %s684_s13, %s807_s13   ;;  %s638_s12 = sphi %s682_s12, %s806_s12  }
   0x5   : > { %s28_s20 = sadd.s32 1, %s654_s16  ;;  %s121_s21 = sadd.s32 1, %s646_s14 }
   0x6   : > { %p30_p0 = scmp.ge.s32.totalorder %s28_s20, 2  ;;  %p131_p1 = scmp.ne.s32.totalorder %s646_s14, %s642_s13 }
   0x7   : > { %p132_p2 = scmp.eq.s32.totalorder %s487_s18, 1  ;;  %p137_p3 = scmp.ne.s32.totalorder %s642_s13, %s638_s12 }
   0x8   : > { %s812_s20 = smov (%p30_p0, %s28_s20), 0  ;;  %p138_p5 = scmp.eq.s32.totalorder %s488_s19, 1 }
   0x9   : > { %p722_p4 = por %p132_p2, %p131_p1  ;;  %s116_s23 = ssub.s32 %s654_s16, %s812_s20 }
   0xa   : > { %p491_p6 = scmp.ge.s32.totalorder %s658_s17, 1  ;;  %p119_p7 = scmp.eq.s32.totalorder %s116_s23, 0 }
   0xb   : > { %p729_p8 = por %p138_p5, %p137_p3  ;;  %p187_p9 = scmp.lt.s32.totalorder %s658_s17, 3 }
   0xc   : > { %s735_s25 = scalar_select %p119_p7, %s646_s14, %s121_s21  }
   0xd   : > { %p188_p10 = pnand %p491_p6, %p187_p9 }
   0xe   : > { %p228_p11 = scmp.lt.s32.totalorder (!%p188_p10), %s650_s15, 1  ;;  %s225_s11 = sand.u32 (!%p188_p10), 1, %s642_s13  }
   0xf   : > { %191 = sbr.rel (%p188_p10) target bundleno = 487 (0x1e7), region = 32  ;;  %s492_s18 = sshll.u32 (!%p188_p10), %s225_s11, 3 }
  0x10   : > { %s499_s19 = sshll.u32 (!%p188_p10), %s650_s15, 3  ;;  %s227_s29 = scalar_lea.vmem (!%p188_p10), [#allocation2], %s492_s18 }
  0x11   : > { %s367_s5 = scalar_lea.sflag (!%p188_p10), [#allocation3], %s225_s11 }
  0x14   : > { %v660_v0 = vmov 0   ;;  %s229_s26 = scalar_select %p228_p11, %s650_s15, 1  ;;  %v253_v16 = vlaneseq  ;;  %vm300_vm5 = vcmask 7168   ;;  %v661_v47 = vmov 0.0  }
  0x15   : > { %566 = vset.pattern.permute.xlu1 %v660_v0  ;;  %567 = vset.pattern.permute.xlu0 %v660_v0 }
  0x16   : > { %s502_s27 = sshll.u32 %s229_s26, 4  ;;  %s493_s4 = sshll.u32 %s229_s26, 3  ;;  %v752_v18 = vand.u32 127, %v253_v16 }
  0x17   : > { %s242_s30 = scalar_lea.vmem %s801_s1, %s502_s27  ;;  %s249_s7 = scalar_lea.vmem %s802_s2, %s493_s4 }
  0x18   : > { %v251_v1 = vld [vmem:[%s242_s30] sm:$0xff]  ;;  %s234_s10 = scalar_lea.vmem %s800_s0, %s493_s4  ;;  %vm357_vm8 = vcmp.eq.s32.totalorder %v752_v18, 2  ;;  %vm355_vm9 = vcmp.eq.s32.totalorder %v752_v18, 1  ;;  %s378_s26 = scalar_lea.hbm %s803_s3, %s499_s19  ;;  %vm353_vm10 = vcmp.eq.s32.totalorder %v752_v18, 0 }
  0x19   : > { %266 = vmax.xlane.f32.xlu0 %v251_v1  ;;  %v745_v2 = vld [vmem:[%s249_s7] sm:$0xff]  ;;  %s765_s30 = sshll.u32 %s227_s29, 4  ;;  %s382_s15 = sshll.u32 %s378_s26, 4  ;;  %s381_s30 = int_to_ptr.vmem [resolvable:$true] %s765_s30  ;;  %s383_s15 = int_to_ptr.hbm [resolvable:$true] %s382_s15 }
  0x1a   : > { %322 = vperm.xlu1 %566, %v745_v2   ;;  %v250_v3 = vld [vmem:[%s234_s10] sm:$0xff]  ;;  %vm312_vm6 = vcmp.ne.s32.totalorder %v745_v2, 4294967196  ;;  %s594_s6 = sshra.s32 %s383_s15, 4  ;;  %s600_s10 = scalar_lea.hbm %s803_s3, 16  ;;  %s595_s6 = int_to_ptr.hbm [resolvable:$true] %s594_s6 }
  0x1b   : > { %v497_v48 = vsel %vm312_vm6, 1.0, %v661_v47  ;;  %s596_s7 = scalar_lea.hbm %s595_s6, 8  ;;  %p601_p1 = scmp.lt.s32.totalorder %s595_s6, %s803_s3 }
  0x1c   : > { %v342_v51 = vsel %vm300_vm5, %v497_v48, 0.0  ;;  %p597_p12 = scmp.ne.s32.totalorder %s595_s6, %s596_s7  ;;  %p602_p2 = scmp.lt.s32.totalorder %s600_s10, %s596_s7 }
  0x1e   : > { %p598_p13 = pnand %p597_p12, %p722_p4  ;;  %p603_p3 = por %p602_p2, %p601_p1 }
  0x20   : > { %p599_p0 = pneg %p598_p13 }
  0x21   : > { %258 = vmax.xlane.f32.xlu0 %v250_v3 }
  0x22   : > { %p604_p5 = pnand %p603_p3, %p599_p0 }
  0x8c   : > { %v267_v4 = vpop.xlane.xlu0 %266  ;;  %v323_v19 = vpop.permute.xlu1 %322 }
  0x8d   : > { %v268_v5 = vsub.f32 %v251_v1, %v267_v4  ;;  %vm324_vm0 = vcmp.eq.s32.totalorder %v752_v18, %v323_v19 }
  0x8f   : > { %v269_v6 = vmul.f32 0.5, %v268_v5 }
  0x91   : > { %v270_v7 = vmul.f32 1.442695, %v269_v6 }
  0x93   : > { %568 = vpow2.f32 %v270_v7 }
  0x94   : > { %v259_v8 = vpop.xlane.xlu0 %258 }
  0x95   : > { %v260_v9 = vsub.f32 %v250_v3, %v259_v8 }
  0x97   : > { %v261_v10 = vmul.f32 0.5, %v260_v9  ;;  %v325_v20 = vsel %vm324_vm0, %v260_v9, 0.0  ;;  %v254_v9 = vshrl.u32 %v253_v16, 7 }
  0x99   : > { %v569_v11 = vpop.eup %568  ;;  %v262_v12 = vmul.f32 1.442695, %v261_v10  ;;  %v274_v13 = vsub.f32 %v269_v6, %v261_v10  ;;  %vm352_vm7 = vcmp.eq.s32.totalorder %v254_v9, 0 }
  0x9a   : > { %272 = vadd.xlane.f32.xlu1 %v569_v11  ;;  %vm358_vm11 = vmand %vm352_vm7, %vm357_vm8 }
  0x9b   : > { %570 = vpow2.f32 %v262_v12  ;;  %v275_v14 = vmul.f32 %v569_v11, %v274_v13  ;;  %vm356_vm12 = vmand %vm352_vm7, %vm355_vm9 }
  0x9c   : > { %vm354_vm13 = vmand %vm352_vm7, %vm353_vm10 }
  0x9d   : > { %276 = vadd.xlane.f32.xlu0 %v275_v14 }
  0xa1   : > { %v571_v15 = vpop.eup %570 }
  0xa2   : > { %264 = vadd.xlane.f32.xlu2 %v571_v15  ;;  %v314_v17 = vmul.f32 %v571_v15, %v571_v15 }
  0xaa   : > { %315 = vadd.xlane.f32.xlu2 %v314_v17 }
  0xb2   : > { %326 = vadd.xlane.f32.xlu2 %v325_v20 }
 0x10d   : > { %v273_v21 = vpop.xlane.xlu1 %272 }
 0x10e   : > { %572 = vrcp.f32 %v273_v21  ;;  %v289_v26 = vand.u32 2147483648, %v273_v21  ;;  %v287_v28 = vand.u32 2147483647, %v273_v21  ;;  %vm283_vm2 = vweird.f32 %v273_v21 }
 0x110   : > { %v290_v31 = vor.u32 1.1754944e-38, %v289_v26  ;;  %vm288_vm4 = vcmp.eq.f32.partialorder %v287_v28, 8.507059e+37  ;;  %v277_v37 = vpop.xlane.xlu0 %276 }
 0x114   : > { %v573_v22 = vpop.eup %572 }
 0x115   : > { %v279_v23 = vmul.f32 %v573_v22, %v273_v21  ;;  %v265_v24 = vpop.xlane.xlu2 %264  ;;  %vm284_vm1 = vweird.f32 %v573_v22 }
 0x116   : > { %574 = vlog2.f32 %v265_v24  ;;  %vm285_vm3 = vmor %vm283_vm2, %vm284_vm1 }
 0x117   : > { %v280_v25 = vsub.f32 1.0, %v279_v23  ;;  %576 = vlog2.f32 %v273_v21 }
 0x119   : > { %v281_v27 = vmul.f32 %v573_v22, %v280_v25 }
 0x11b   : > { %v282_v29 = vadd.f32 %v573_v22, %v281_v27 }
 0x11c   : > { %v575_v30 = vpop.eup %574 }
 0x11d   : > { %v286_v32 = vsel %vm285_vm3, %v573_v22, %v282_v29  ;;  %v294_v33 = vmul.f32 0.6931472, %v575_v30  ;;  %v316_v34 = vpop.xlane.xlu2 %315  ;;  %v577_v35 = vpop.eup %576 }
 0x11e   : > { %v291_v36 = vsel %vm288_vm4, %v290_v31, %v286_v32  ;;  %578 = vlog2.f32 %v316_v34  ;;  %v297_v40 = vmul.f32 0.6931472, %v577_v35 }
 0x11f   : > { %v292_v38 = vmul.f32 %v291_v36, %v277_v37 }
 0x121   : > { %v295_v39 = vadd.f32 %v294_v33, %v292_v38 }
 0x123   : > { %v298_v41 = vsub.f32 %v295_v39, %v297_v40 }
 0x124   : > { %v579_v42 = vpop.eup %578 }
 0x125   : > { %v318_v43 = vmul.f32 0.6931472, %v579_v42  ;;  %v327_v44 = vpop.xlane.xlu2 %326  ;;  %v301_v45 = vsel %vm300_vm5, %v298_v41, 0.0 }
 0x126   : > { %302 = vadd.xlane.f32.xlu0 %v301_v45 }
 0x127   : > { %v328_v46 = vsub.f32 %v318_v43, %v327_v44 }
 0x129   : > { %v329_v49 = vsel %vm312_vm6, %v328_v46, 0.0 }
 0x12a   : > { %v330_v50 = vsel %vm300_vm5, %v329_v49, 0.0 }
 0x12b   : > { %331 = vadd.xlane.f32.xlu2 %v330_v50 }
 0x12e   : > { %343 = vadd.xlane.f32.xlu0 %v342_v51 }
 0x199   : > { %v303_v52 = vpop.xlane.xlu0 %302 }
 0x19a   : > { %v304_v53 = vrot.slane %v303_v52, 4 }
 0x19c   : > { %v305_v54 = vadd.f32 %v304_v53, %v303_v52 }
 0x19e   : > { %v306_v55 = vrot.slane %v305_v54, 2  ;;  %v332_v56 = vpop.xlane.xlu2 %331 }
 0x19f   : > { %v333_v57 = vrot.slane %v332_v56, 4 }
 0x1a0   : > { %v307_v58 = vadd.f32 %v306_v55, %v305_v54 }
 0x1a1   : > { %v334_v59 = vadd.f32 %v333_v57, %v332_v56  ;;  %v344_v60 = vpop.xlane.xlu0 %343 }
 0x1a2   : > { %v345_v61 = vrot.slane %v344_v60, 4  ;;  %v308_v62 = vrot.slane %v307_v58, 1 }
 0x1a3   : > { %v335_v63 = vrot.slane %v334_v59, 2 }
 0x1a4   : > { %v346_v0 = vadd.f32 %v345_v61, %v344_v60  ;;  %v309_v1 = vadd.f32 %v308_v62, %v307_v58 }
 0x1a5   : > { %v336_v2 = vadd.f32 %v335_v63, %v334_v59 }
 0x1a6   : > { %v347_v3 = vrot.slane %v346_v0, 2  ;;  %503 = vpush %v309_v1 }
 0x1a7   : > { %v337_v4 = vrot.slane %v336_v2, 1 }
 0x1a8   : > { %v348_v5 = vadd.f32 %v347_v3, %v346_v0 }
 0x1a9   : > { %v338_v6 = vadd.f32 %v337_v4, %v336_v2 }
 0x1aa   : > { %v349_v7 = vrot.slane %v348_v5, 1 }
 0x1ab   : > { %505 = vpush %v338_v6 }
 0x1ac   : > { %v350_v8 = vadd.f32 %v349_v7, %v348_v5 }
 0x1ae   : > { %507 = vpush %v350_v8 }
 0x1d7   : > { %s504_s27 = spop %503 }
 0x1d8   : > { %v363_v13 = vstv %s504_s27 }
 0x1dc   : > { %s506_s28 = spop %505 }
 0x1dd   : > { %v361_v11 = vstv %s506_s28 }
 0x1df   : > { %s508_s4 = spop %507 }
 0x1e0   : > { %v359_v10 = vstv %s508_s4 }
 0x1e1   : > { %v360_v12 = vsel %vm358_vm11, %v359_v10, 0.0 }
 0x1e2   : > { %v362_v14 = vsel %vm356_vm12, %v361_v11, %v360_v12 }
 0x1e3   : > { %v364_v15 = vsel %vm354_vm13, %v363_v13, %v362_v14 }
 0x1e4   : > { %365 = vst [vmem:[%s227_s29] sm:$0xff] %v364_v15 }
 0x1e5   : > { %607 = shalt.err (!%p604_p5)
}
 0x1e6   : > { %509 = dma.vmem_to_hbm [thread:$0]  (%p722_p4), %s381_s30, 128, %s383_s15, %s367_s5  }
 0x1e7 PF: > { %p515_p6 = scmp.ge.s32.totalorder %s658_s17, 2  ;;  %s394_s11 = sand.u32 1, %s638_s12  }
 0x1e8   : > { %s395_s21 = scalar_lea.sflag [#allocation3], %s394_s11 }
 0x1e9   : > { %p512_p7 = pnand %p515_p6, %p729_p8 }
 0x1eb   : > { %p513_p9 = pneg %p512_p7 }
 0x1ed   : > { %633 = dma.done.wait (%p513_p9), %s395_s21, 128  }
 0x1ee   : > { %635 = vsyncadd (%p513_p9), %s395_s21, 4294967168  ;;  %s16_s17 = sadd.s32 1, %s658_s17   ;;  %s806_s12 = smov %s642_s13 }
 0x1ef   : > { %p13_p10 = scmp.ge.s32.totalorder %s16_s17, 4   ;;  %s807_s13 = smov %s646_s14 }
 0x1f0   : > { %s808_s14 = smov %s735_s25  ;;  %s809_s15 = smov %s654_s16 }
 0x1f1   : > { %s810_s16 = smov %s812_s20  ;;  %15 = sbr.rel (!%p13_p10) target bundleno = 4 (0x4), region = 73 }
 0x1f6   :  { %401 = vsyncpa [#allocation3], 1 }
 0x1f7   :  { %403 = vsyncpa [#allocation3 + $0x1], 1 }

</bundles_post_ra>
